<compile_context>
chip_gen: v7x
topology: tpu7x:2x2x1
jax: 0.10.0
libtpu: 0.0.40
codegen_flags: <defaults>
</compile_context>

<pallas_src>
import functools

import jax
import jax.numpy as jnp
import numpy as np
from jax.experimental import pallas as pl
from jax.experimental.pallas import tpu as pltpu


def _round_up(x, m):
    return ((x + m - 1) // m) * m


# ----------------------------------------------------------------------------
# Pallas kernel: both folding MLPs fused; grid = (batch, point-tile).
# ----------------------------------------------------------------------------
def _fold_kernel(seed_ref, r_ref, w1s_ref, wbb_ref, w12_ref, w2c_ref, bias_ref,
                 out_ref, *, hidden, freedom, chunk):
    # seed_ref : (2, TILE_N)           bf16  shared folding seed tile
    # r_ref    : (1, 2H, 1)            f32   per-batch feature columns [r1; r2]
    # w1s_ref  : (H, 2)                bf16  seed channels of folding1 conv a
    # wbb_ref  : (H, H)                bf16  [w1b_t ; w2b_t] stacked on axis 0
    # w12_ref  : (H, H/2)              bf16  w1c folded into folding2 conv a
    # w2c_ref  : (freedom, H/2)        bf16
    # bias_ref : (H + freedom, 1)      f32   [b1b ; b2b ; b2c]
    # out_ref  : (1, freedom, TILE_N)  f32   lane-dense output slab
    f32 = jnp.float32
    bf16 = jnp.bfloat16
    h2 = hidden // 2

    # Tiny per-step unpacking of the packed operands (static slices are free).
    r = r_ref[0]                                   # (2H, 1) f32
    r1 = r[0:hidden].astype(bf16)                  # (H, 1)
    r2 = r[hidden:2 * hidden].astype(bf16)         # (H, 1)
    bias = bias_ref[...]                           # (H + freedom, 1) f32
    b1b = bias[0:h2].astype(bf16)                  # (H/2, 1)
    b2b = bias[h2:hidden].astype(bf16)             # (H/2, 1)
    b2c = bias[hidden:hidden + freedom]            # (freedom, 1) f32 (no ReLU after)

    w1s = w1s_ref[...]                             # (H, 2) bf16
    wbb = wbb_ref[...]                             # (H, H) bf16
    w1b = wbb[0:h2]                                # (H/2, H)
    w2b = wbb[h2:hidden]                           # (H/2, H)
    w12 = w12_ref[...]                             # (H, H/2)
    w2c = w2c_ref[...]                             # (freedom, H/2)

    n_chunks = seed_ref.shape[1] // chunk

    # Walk the grid tile in lane-dense sub-chunks: amortizes grid-step overhead
    # over a large TILE_N while keeping live (H, chunk) intermediates small.
    @pl.loop(0, n_chunks)
    def _(c):
        off = pl.multiple_of(c * chunk, chunk)
        seed = seed_ref[:, pl.ds(off, chunk)]                   # (2, chunk) bf16

        # folding1 conv a: seed part on the MXU (K=2, MXU is otherwise idle),
        # feature part pre-reduced per batch into r1.  Bias-add + ReLU in bf16
        # (accumulation stays f32 inside the MXU; correct on v5e too, just
        # upcast by its f32-only VALUs).
        h = jnp.dot(w1s, seed, preferred_element_type=f32)
        h = jnp.maximum(h.astype(bf16) + r1, 0)                 # (H, chunk) bf16

        # folding1 conv b
        h = jnp.dot(w1b, h, preferred_element_type=f32)
        h = jnp.maximum(h.astype(bf16) + b1b, 0)                # (H/2, chunk)

        # folding1 conv c fused with folding2 conv a (fd1 never materialized;
        # feature part pre-reduced into r2).
        h = jnp.dot(w12, h, preferred_element_type=f32)
        h = jnp.maximum(h.astype(bf16) + r2, 0)                 # (H, chunk)

        # folding2 conv b
        h = jnp.dot(w2b, h, preferred_element_type=f32)
        h = jnp.maximum(h.astype(bf16) + b2b, 0)                # (H/2, chunk)

        # folding2 conv c -> lane-dense f32 output slab
        fd2 = jnp.dot(w2c, h, preferred_element_type=f32)       # (freedom, chunk)
        out_ref[0, :, pl.ds(off, chunk)] = fd2 + b2c


def fold_pallas(seed, r, kw, *, tile_n, chunk):
    """seed: (2, N_pad) bf16; r: (bs, 2H, 1) f32; kw: packed kernel operands.
    Returns (bs, freedom, N_pad) f32 in the PyTorch (bs, C, N) layout."""
    _, n_pad = seed.shape
    bs, two_h, _ = r.shape
    hidden = two_h // 2
    freedom = kw["w2c_t"].shape[0]
    num_tiles = n_pad // tile_n

    w1s, wbb, w12, w2c, bias = (kw["w1s_t"], kw["wbb_t"], kw["w12_t"],
                                kw["w2c_t"], kw["bias_c"])

    def const_spec(a):
        # Constant across the whole grid: one buffer is enough; a second
        # pipeline buffer would just be dead VMEM (matters on v7x/v5e budgets).
        return pl.BlockSpec(a.shape, lambda b, t: (0,) * a.ndim,
                            pipeline_mode=pl.Buffered(1))

    grid_spec = pltpu.PrefetchScalarGridSpec(
        num_scalar_prefetch=0,
        grid=(bs, num_tiles),
        in_specs=[
            pl.BlockSpec((2, tile_n), lambda b, t: (0, t)),        # seed tile
            pl.BlockSpec((1, two_h, 1), lambda b, t: (b, 0, 0)),   # [r1; r2]
            const_spec(w1s), const_spec(wbb), const_spec(w12),
            const_spec(w2c), const_spec(bias),
        ],
        out_specs=pl.BlockSpec((1, freedom, tile_n), lambda b, t: (b, 0, t)),
    )

    flops = 2 * bs * n_pad * (2 * hidden + 3 * hidden * (hidden // 2)
                              + freedom * (hidden // 2))
    bytes_accessed = (int(seed.size) * 2 + int(r.size) * 4 + int(bias.size) * 4
                      + (int(w1s.size) + int(wbb.size) + int(w12.size)
                         + int(w2c.size)) * 2
                      + bs * freedom * n_pad * 4)

    kernel = functools.partial(_fold_kernel, hidden=hidden, freedom=freedom,
                               chunk=chunk)
    return pl.pallas_call(
        kernel,
        out_shape=jax.ShapeDtypeStruct((bs, freedom, n_pad), jnp.float32),
        grid_spec=grid_spec,
        compiler_params=pltpu.CompilerParams(
            dimension_semantics=("parallel", "parallel")),
        cost_estimate=pl.CostEstimate(flops=flops, transcendentals=0,
                                      bytes_accessed=bytes_accessed),
    )(seed, r, w1s, wbb, w12, w2c, bias)


# ----------------------------------------------------------------------------
# Module-level glue: parameter init, seed grid, BN folding, algebraic rewrites.
# ----------------------------------------------------------------------------
def make_fold_params(key, in_channel, hidden_dim, freedom):
    """Deterministic synthetic weights.  Conv1d(k=1) weight (out,in,1) -> (in,out)."""
    dims1 = [(in_channel + 2, hidden_dim), (hidden_dim, hidden_dim // 2),
             (hidden_dim // 2, freedom)]
    dims2 = [(in_channel + freedom, hidden_dim), (hidden_dim, hidden_dim // 2),
             (hidden_dim // 2, freedom)]
    keys = jax.random.split(key, 12)
    params = []
    eps = 1e-5
    bn_scale = 1.0 / np.sqrt(1.0 + eps)  # gamma=1, var=1 (PyTorch BN defaults, eval)
    for i, (cin, cout) in enumerate(dims1 + dims2):
        w = jax.random.normal(keys[2 * i], (cin, cout), jnp.float32) * 0.1
        b = jax.random.normal(keys[2 * i + 1], (1, cout), jnp.float32) * 0.05
        # Fold inference BatchNorm into the first two convs of each branch.
        is_last_of_branch = (i % 3) == 2
        if not is_last_of_branch:
            w = w * bn_scale
            b = b * bn_scale
        params.extend([w, b])
    return tuple(params)


def prepare_kernel_params(params, freedom):
    """Split out the broadcast-feature parts, fold w1c into w2a, pack the tiny
    operands, transpose to channel-major and cast MXU operands to bf16."""
    (w1a, b1a, w1b, b1b, w1c, b1c, w2a, b2a, w2b, b2b, w2c, b2c) = params
    f32, bf16 = jnp.float32, jnp.bfloat16
    w1a_seed = w1a[:2]            # (2, H)        seed channels of folding1 conv a
    w1a_feat = w1a[2:]            # (C, H)        feature channels (per-batch const)
    w2a_fd = w2a[:freedom]        # (freedom, H)  fd1 channels of folding2 conv a
    w2a_feat = w2a[freedom:]      # (C, H)

    # Fold w1c into folding2 conv a.  NOTE: only valid because the PyTorch
    # module has NO BatchNorm/ReLU after folding1's final conv (linear maps
    # compose).  Round the factors (not just the product) to bf16 so the fold
    # matches the reference's matmul-input precision; accumulate in f32.
    w12 = jnp.dot(w1c.astype(bf16), w2a_fd.astype(bf16),
                  preferred_element_type=f32)      # (H/2, H)
    b12 = jnp.dot(b1c.astype(bf16), w2a_fd.astype(bf16),
                  preferred_element_type=f32)      # (1, H)

    kernel_weights = dict(
        w1s_t=w1a_seed.T.astype(bf16),                              # (H, 2)
        wbb_t=jnp.concatenate([w1b.T, w2b.T], axis=0).astype(bf16),  # (H, H)
        w12_t=w12.T.astype(bf16),                                   # (H, H/2)
        w2c_t=w2c.T.astype(bf16),                                   # (freedom, H/2)
        bias_c=jnp.concatenate([b1b.T, b2b.T, b2c.T], axis=0),      # (H+f, 1) f32
    )
    feat_proj = dict(
        # Fused feature projection for both branches -> packed (bs, 2H, 1).
        w_feat=jnp.concatenate([w1a_feat, w2a_feat], axis=1).astype(bf16),  # (C, 2H)
        b_feat=jnp.concatenate([b1a, b2a + b12], axis=1),                   # (1, 2H)
    )
    return kernel_weights, feat_proj


def make_folding_seed(step):
    lin = jnp.linspace(-1.0, 1.0, step, dtype=jnp.float32)
    a = jnp.tile(lin, step)      # (1,step) expanded over rows, then flattened
    b = jnp.repeat(lin, step)    # (step,1) expanded over cols, then flattened
    return jnp.stack([a, b], axis=0)   # (2, step*step)


def fold_forward(x, params, step, in_channel, freedom, tile_n=None):
    """x: (bs, in_channel) latent codes -> (bs, freedom, step*step) f32."""
    del in_channel  # implied by param shapes
    n = step * step
    kw, fp = prepare_kernel_params(params, freedom)

    # Single fused per-batch projection of the broadcast feature tensor:
    # (bs, C) @ (C, 2H) -> packed bias columns [r1; r2] for both branches.
    r = (jnp.dot(x.astype(jnp.bfloat16), fp["w_feat"],
                 preferred_element_type=jnp.float32) + fp["b_feat"])[:, :, None]

    # Tile selection: biggest lane-dense tile (<= 2048); pad N up to a tile
    # multiple instead of ragged full-extent blocks.  Per-step VMEM stays far
    # below the scoped defaults (16 MiB v5e / 32 MiB v6e,v7x) thanks to
    # single-buffered constants + in-kernel sub-chunking, so no vmem_limit
    # override is needed.  bs >= 2 keeps both v7x TensorCores busy.
    if tile_n is None:
        tile_n = min(2048, _round_up(n, 128))
    n_pad = _round_up(n, tile_n)
    chunk = 256 if tile_n % 256 == 0 else 128
    chunk = min(chunk, tile_n)

    seed = make_folding_seed(step)
    if n_pad != n:
        seed = jnp.pad(seed, ((0, 0), (0, n_pad - n)))
    seed = seed.astype(jnp.bfloat16)

    out = fold_pallas(seed, r, kw, tile_n=tile_n, chunk=chunk)  # (bs, freedom, n_pad)
    return out[:, :, :n] if n_pad != n else out


def fold_forward_ref(x, params, step, in_channel, freedom):
    """Pure-JAX reference following the PyTorch op ordering (concat + sequential
    convs), with the same bf16-input / f32-accumulate matmul precision."""
    bs = x.shape[0]
    n = step * step
    seed = make_folding_seed(step)
    feat = jnp.broadcast_to(x[:, None, :], (bs, n, in_channel))
    seed_b = jnp.broadcast_to(seed.T[None], (bs, n, 2))
    (w1a, b1a, w1b, b1b, w1c, b1c, w2a, b2a, w2b, b2b, w2c, b2c) = params
    bf16 = jnp.bfloat16

    def mlp(z, wa, ba, wb, bb, wc, bc):
        h = jnp.dot(z.astype(bf16), wa.astype(bf16),
                    preferred_element_type=jnp.float32) + ba
        h = jnp.maximum(h, 0.0)
        h = jnp.dot(h.astype(bf16), wb.astype(bf16),
                    preferred_element_type=jnp.float32) + bb
        h = jnp.maximum(h, 0.0)
        return jnp.dot(h.astype(bf16), wc.astype(bf16),
                       preferred_element_type=jnp.float32) + bc

    x1 = jnp.concatenate([seed_b, feat], axis=-1)
    fd1 = mlp(x1, w1a, b1a, w1b, b1b, w1c, b1c)
    x2 = jnp.concatenate([fd1, feat], axis=-1)
    fd2 = mlp(x2, w2a, b2a, w2b, b2b, w2c, b2c)
    return jnp.transpose(fd2, (0, 2, 1))


if __name__ == "__main__":
    # Small, self-consistent shapes (N = step^2 = 256 points, one 256-lane tile).
    bs, in_channel, step, hidden_dim, freedom = 2, 32, 16, 64, 2

    key = jax.random.PRNGKey(0)
    kx, kp = jax.random.split(key)
    x = jax.random.normal(kx, (bs, in_channel), jnp.float32)
    params = make_fold_params(kp, in_channel, hidden_dim, freedom)

    fwd = jax.jit(functools.partial(
        fold_forward, step=step, in_channel=in_channel, freedom=freedom))
    out = fwd(x, params)
    jax.block_until_ready(out)

    ref = fold_forward_ref(x, params, step, in_channel, freedom)
    # bf16 MXU inputs, bf16 bias+ReLU on intermediates and the algebraic
    # refactoring (feature -> per-batch bias columns, w1c folded into w2a)
    # reorder/round floating-point sums; observed diffs are a few 1e-3.
    np.testing.assert_allclose(np.asarray(out), np.asarray(ref),
                               rtol=2e-2, atol=2e-2)
    assert out.shape == (bs, freedom, step * step)
    print("KERNEL_OK")
</pallas_src>

<mosaic_0001>
module attributes {stable_mosaic.version = 11 : i64} {
  func.func @_fold_kernel(%arg0: i32, %arg1: i32, %arg2: memref<2x256xbf16, #tpu.memory_space<vmem>>, %arg3: memref<1x128x1xf32, #tpu.memory_space<vmem>>, %arg4: memref<64x2xbf16, #tpu.memory_space<vmem>>, %arg5: memref<64x64xbf16, #tpu.memory_space<vmem>>, %arg6: memref<64x32xbf16, #tpu.memory_space<vmem>>, %arg7: memref<2x32xbf16, #tpu.memory_space<vmem>>, %arg8: memref<66x1xf32, #tpu.memory_space<vmem>>, %arg9: memref<1x2x256xf32, #tpu.memory_space<vmem>>) attributes {dimension_semantics = [#tpu.dimension_semantics<parallel>, #tpu.dimension_semantics<parallel>], iteration_bounds = array<i64: 2, 1>, scalar_prefetch = 0 : i64, scratch_operands = 0 : i64, tpu.core_type = #tpu.core_type<tc>, window_params = [{transform_indices = @transform_0, window_bounds = array<i64: 2, 256>}, {transform_indices = @transform_1, window_bounds = array<i64: 1, 128, 1>}, {pipeline_mode = #tpu.pipeline_mode<synchronous>, transform_indices = @transform_2, window_bounds = array<i64: 64, 2>}, {pipeline_mode = #tpu.pipeline_mode<synchronous>, transform_indices = @transform_3, window_bounds = array<i64: 64, 64>}, {pipeline_mode = #tpu.pipeline_mode<synchronous>, transform_indices = @transform_4, window_bounds = array<i64: 64, 32>}, {pipeline_mode = #tpu.pipeline_mode<synchronous>, transform_indices = @transform_5, window_bounds = array<i64: 2, 32>}, {pipeline_mode = #tpu.pipeline_mode<synchronous>, transform_indices = @transform_6, window_bounds = array<i64: 66, 1>}, {transform_indices = @transform_7, window_bounds = array<i64: 1, 2, 256>}]} {
    %c0 = arith.constant 0 : index
    %c0_0 = arith.constant 0 : index
    %c0_1 = arith.constant 0 : index
    %0 = vector.load %arg3[%c0, %c0_0, %c0_1] : memref<1x128x1xf32, #tpu.memory_space<vmem>>, vector<1x128x1xf32>
    %1 = vector.shape_cast %0 : vector<1x128x1xf32> to vector<128x1xf32>
    %2 = vector.extract_strided_slice %1 {offsets = [0, 0], sizes = [64, 1], strides = [1, 1]} : vector<128x1xf32> to vector<64x1xf32>
    %3 = arith.truncf %2 : vector<64x1xf32> to vector<64x1xbf16>
    %4 = vector.extract_strided_slice %1 {offsets = [64, 0], sizes = [64, 1], strides = [1, 1]} : vector<128x1xf32> to vector<64x1xf32>
    %5 = arith.truncf %4 : vector<64x1xf32> to vector<64x1xbf16>
    %c0_2 = arith.constant 0 : index
    %c0_3 = arith.constant 0 : index
    %6 = vector.load %arg8[%c0_2, %c0_3] : memref<66x1xf32, #tpu.memory_space<vmem>>, vector<66x1xf32>
    %7 = vector.extract_strided_slice %6 {offsets = [0, 0], sizes = [32, 1], strides = [1, 1]} : vector<66x1xf32> to vector<32x1xf32>
    %8 = arith.truncf %7 : vector<32x1xf32> to vector<32x1xbf16>
    %9 = vector.extract_strided_slice %6 {offsets = [32, 0], sizes = [32, 1], strides = [1, 1]} : vector<66x1xf32> to vector<32x1xf32>
    %10 = arith.truncf %9 : vector<32x1xf32> to vector<32x1xbf16>
    %11 = vector.extract_strided_slice %6 {offsets = [64, 0], sizes = [2, 1], strides = [1, 1]} : vector<66x1xf32> to vector<2x1xf32>
    %c0_4 = arith.constant 0 : index
    %c0_5 = arith.constant 0 : index
    %12 = vector.load %arg4[%c0_4, %c0_5] : memref<64x2xbf16, #tpu.memory_space<vmem>>, vector<64x2xbf16>
    %c0_6 = arith.constant 0 : index
    %c0_7 = arith.constant 0 : index
    %13 = vector.load %arg5[%c0_6, %c0_7] : memref<64x64xbf16, #tpu.memory_space<vmem>>, vector<64x64xbf16>
    %14 = vector.extract_strided_slice %13 {offsets = [0, 0], sizes = [32, 64], strides = [1, 1]} : vector<64x64xbf16> to vector<32x64xbf16>
    %15 = vector.extract_strided_slice %13 {offsets = [32, 0], sizes = [32, 64], strides = [1, 1]} : vector<64x64xbf16> to vector<32x64xbf16>
    %c0_8 = arith.constant 0 : index
    %c0_9 = arith.constant 0 : index
    %16 = vector.load %arg6[%c0_8, %c0_9] : memref<64x32xbf16, #tpu.memory_space<vmem>>, vector<64x32xbf16>
    %c0_10 = arith.constant 0 : index
    %c0_11 = arith.constant 0 : index
    %17 = vector.load %arg7[%c0_10, %c0_11] : memref<2x32xbf16, #tpu.memory_space<vmem>>, vector<2x32xbf16>
    %c0_i32 = arith.constant 0 : i32
    %c1_i32 = arith.constant 1 : i32
    %18 = arith.muli %c0_i32, %c1_i32 : i32
    %c0_i32_12 = arith.constant 0 : i32
    %19 = arith.addi %c0_i32_12, %18 : i32
    %c256_i32 = arith.constant 256 : i32
    %20 = arith.muli %19, %c256_i32 : i32
    %21 = tpu.assume_multiple %20, 256 : i32
    %c0_13 = arith.constant 0 : index
    %22 = arith.index_cast %21 : i32 to index
    %23 = vector.load %arg2[%c0_13, %22] : memref<2x256xbf16, #tpu.memory_space<vmem>>, vector<2x256xbf16>
    %cst = arith.constant dense<0.000000e+00> : vector<64x256xf32>
    %24 = tpu.matmul %12, %23, %cst {dimension_numbers = #tpu.dot_dimension_numbers<[1], [0], [0], [1], [0, 0, 1, 1], [], []>} : vector<64x2xbf16>, vector<2x256xbf16>, vector<64x256xf32> -> vector<64x256xf32>
    %25 = arith.truncf %24 : vector<64x256xf32> to vector<64x256xbf16>
    %26 = vector.broadcast %3 : vector<64x1xbf16> to vector<64x256xbf16>
    %27 = arith.addf %25, %26 : vector<64x256xbf16>
    %cst_14 = arith.constant 0.000000e+00 : bf16
    %28 = vector.broadcast %cst_14 : bf16 to vector<64x256xbf16>
    %29 = arith.maximumf %27, %28 : vector<64x256xbf16>
    %cst_15 = arith.constant dense<0.000000e+00> : vector<32x256xf32>
    %30 = tpu.matmul %14, %29, %cst_15 {dimension_numbers = #tpu.dot_dimension_numbers<[1], [0], [0], [1], [0, 0, 1, 1], [], []>} : vector<32x64xbf16>, vector<64x256xbf16>, vector<32x256xf32> -> vector<32x256xf32>
    %31 = arith.truncf %30 : vector<32x256xf32> to vector<32x256xbf16>
    %32 = vector.broadcast %8 : vector<32x1xbf16> to vector<32x256xbf16>
    %33 = arith.addf %31, %32 : vector<32x256xbf16>
    %cst_16 = arith.constant 0.000000e+00 : bf16
    %34 = vector.broadcast %cst_16 : bf16 to vector<32x256xbf16>
    %35 = arith.maximumf %33, %34 : vector<32x256xbf16>
    %cst_17 = arith.constant dense<0.000000e+00> : vector<64x256xf32>
    %36 = tpu.matmul %16, %35, %cst_17 {dimension_numbers = #tpu.dot_dimension_numbers<[1], [0], [0], [1], [0, 0, 1, 1], [], []>} : vector<64x32xbf16>, vector<32x256xbf16>, vector<64x256xf32> -> vector<64x256xf32>
    %37 = arith.truncf %36 : vector<64x256xf32> to vector<64x256xbf16>
    %38 = vector.broadcast %5 : vector<64x1xbf16> to vector<64x256xbf16>
    %39 = arith.addf %37, %38 : vector<64x256xbf16>
    %cst_18 = arith.constant 0.000000e+00 : bf16
    %40 = vector.broadcast %cst_18 : bf16 to vector<64x256xbf16>
    %41 = arith.maximumf %39, %40 : vector<64x256xbf16>
    %cst_19 = arith.constant dense<0.000000e+00> : vector<32x256xf32>
    %42 = tpu.matmul %15, %41, %cst_19 {dimension_numbers = #tpu.dot_dimension_numbers<[1], [0], [0], [1], [0, 0, 1, 1], [], []>} : vector<32x64xbf16>, vector<64x256xbf16>, vector<32x256xf32> -> vector<32x256xf32>
    %43 = arith.truncf %42 : vector<32x256xf32> to vector<32x256xbf16>
    %44 = vector.broadcast %10 : vector<32x1xbf16> to vector<32x256xbf16>
    %45 = arith.addf %43, %44 : vector<32x256xbf16>
    %cst_20 = arith.constant 0.000000e+00 : bf16
    %46 = vector.broadcast %cst_20 : bf16 to vector<32x256xbf16>
    %47 = arith.maximumf %45, %46 : vector<32x256xbf16>
    %cst_21 = arith.constant dense<0.000000e+00> : vector<2x256xf32>
    %48 = tpu.matmul %17, %47, %cst_21 {dimension_numbers = #tpu.dot_dimension_numbers<[1], [0], [0], [1], [0, 0, 1, 1], [], []>} : vector<2x32xbf16>, vector<32x256xbf16>, vector<2x256xf32> -> vector<2x256xf32>
    %49 = vector.broadcast %11 : vector<2x1xf32> to vector<2x256xf32>
    %50 = arith.addf %48, %49 : vector<2x256xf32>
    %c0_22 = arith.constant 0 : index
    %c0_23 = arith.constant 0 : index
    %51 = arith.index_cast %21 : i32 to index
    %52 = vector.load %arg9[%c0_22, %c0_23, %51] : memref<1x2x256xf32, #tpu.memory_space<vmem>>, vector<1x2x256xf32>
    %53 = vector.shape_cast %52 : vector<1x2x256xf32> to vector<2x256xf32>
    %54 = vector.shape_cast %50 : vector<2x256xf32> to vector<1x2x256xf32>
    tpu.vector_store %arg9[%c0_22, %c0_23, %51], %54 {strides = array<i32>} : memref<1x2x256xf32, #tpu.memory_space<vmem>>, vector<1x2x256xf32>,
    %c1_i32_24 = arith.constant 1 : i32
    return
  }
  func.func @transform_0(%arg0: i32, %arg1: i32) -> (i32, i32) {
    %c0_i32 = arith.constant 0 : i32
    %c0_i32_0 = arith.constant 0 : i32
    return %c0_i32, %arg1 : i32, i32
  }
  func.func @transform_1(%arg0: i32, %arg1: i32) -> (i32, i32, i32) {
    %c0_i32 = arith.constant 0 : i32
    %c0_i32_0 = arith.constant 0 : i32
    %c0_i32_1 = arith.constant 0 : i32
    return %arg0, %c0_i32, %c0_i32_0 : i32, i32, i32
  }
  func.func @transform_2(%arg0: i32, %arg1: i32) -> (i32, i32) {
    %c0_i32 = arith.constant 0 : i32
    %c0_i32_0 = arith.constant 0 : i32
    %c0_i32_1 = arith.constant 0 : i32
    return %c0_i32, %c0_i32_0 : i32, i32
  }
  func.func @transform_3(%arg0: i32, %arg1: i32) -> (i32, i32) {
    %c0_i32 = arith.constant 0 : i32
    %c0_i32_0 = arith.constant 0 : i32
    %c0_i32_1 = arith.constant 0 : i32
    return %c0_i32, %c0_i32_0 : i32, i32
  }
  func.func @transform_4(%arg0: i32, %arg1: i32) -> (i32, i32) {
    %c0_i32 = arith.constant 0 : i32
    %c0_i32_0 = arith.constant 0 : i32
    %c0_i32_1 = arith.constant 0 : i32
    return %c0_i32, %c0_i32_0 : i32, i32
  }
  func.func @transform_5(%arg0: i32, %arg1: i32) -> (i32, i32) {
    %c0_i32 = arith.constant 0 : i32
    %c0_i32_0 = arith.constant 0 : i32
    %c0_i32_1 = arith.constant 0 : i32
    return %c0_i32, %c0_i32_0 : i32, i32
  }
  func.func @transform_6(%arg0: i32, %arg1: i32) -> (i32, i32) {
    %c0_i32 = arith.constant 0 : i32
    %c0_i32_0 = arith.constant 0 : i32
    %c0_i32_1 = arith.constant 0 : i32
    return %c0_i32, %c0_i32_0 : i32, i32
  }
  func.func @transform_7(%arg0: i32, %arg1: i32) -> (i32, i32, i32) {
    %c0_i32 = arith.constant 0 : i32
    %c0_i32_0 = arith.constant 0 : i32
    return %arg0, %c0_i32, %arg1 : i32, i32, i32
  }
}

</mosaic_0001>

<bundles_post_ra>
// kernel: fold_forward.1
= control target key start
LH: loop header
LB: loop body
LE: loop exit
PB: predicated region body
PF: predicated region fallthrough
CT: control target
= control target key end

     0   :  { %12 = vsyncpa [#allocation3], 0  ;;  %s1537_s0 = inlined_call_operand.vmem [shape: bf16[2,256], index: 0, kind: input, shape index: {}]   ;;  %s1538_s1 = inlined_call_operand.vmem [shape: f32[2,128,1], index: 1, kind: input, shape index: {}]   ;;  %s1539_s2 = inlined_call_operand.vmem [shape: bf16[64,2], index: 2, kind: input, shape index: {}]   ;;  %s1540_s3 = inlined_call_operand.vmem [shape: bf16[64,64], index: 3, kind: input, shape index: {}]   ;;  %s1541_s4 = inlined_call_operand.vmem [shape: bf16[64,32], index: 4, kind: input, shape index: {}]   ;;  %s1542_s5 = inlined_call_operand.vmem [shape: bf16[2,32], index: 5, kind: input, shape index: {}]   ;;  %s1543_s6 = inlined_call_operand.vmem [shape: f32[66,1], index: 6, kind: input, shape index: {}]   ;;  %s1544_s7 = inlined_call_operand.hbm [shape: f32[2,2,256], index: 7, kind: output, shape index: {}]  }
   0x1   :  { %14 = vsyncpa [#allocation3 + $0x1], 0  ;;  %s1286_s24 = smov 0   ;;  %s1288_s25 = smov 0  }
   0x2   :  { %s1290_s26 = smov 0   ;;  %s1292_s27 = smov 0  }
   0x3   :  { %s1294_s28 = smov 0   ;;  %s1296_s29 = smov 0  }
   0x4 LB: > { %s1048_s30 = sadd.s32 4294967295, %s1241_s29   ;;  %s1049_s8 = sadd.s32 4294967294, %s1241_s29   ;;  %s1241_s29 = sphi %s1296_s29, %s20_s29   ;;  %s1237_s28 = sphi %s1294_s28, %s1551_s28   ;;  %s1233_s27 = sphi %s1292_s27, %s1550_s27   ;;  %s1229_s26 = sphi %s1290_s26, %s1549_s26   ;;  %s1225_s25 = sphi %s1288_s25, %s1548_s25   ;;  %s1221_s24 = sphi %s1286_s24, %s1547_s24  }
   0x5   : > { %s32_s9 = sadd.s32 1, %s1237_s28  ;;  %s198_s10 = sadd.s32 1, %s1229_s26 }
   0x6   : > { %p34_p0 = scmp.ge.s32.totalorder %s32_s9, 2  ;;  %p208_p1 = scmp.ne.s32.totalorder %s1229_s26, %s1225_s25 }
   0x7   : > { %p209_p2 = scmp.eq.s32.totalorder %s1048_s30, 1  ;;  %p214_p3 = scmp.ne.s32.totalorder %s1225_s25, %s1221_s24 }
   0x8   : > { %s1553_s9 = smov (%p34_p0, %s32_s9), 0  ;;  %p215_p5 = scmp.eq.s32.totalorder %s1049_s8, 1 }
   0x9   : > { %p1326_p4 = por %p209_p2, %p208_p1  ;;  %s193_s12 = ssub.s32 %s1237_s28, %s1553_s9 }
   0xa   : > { %p1053_p6 = scmp.ge.s32.totalorder %s1241_s29, 1  ;;  %p196_p7 = scmp.eq.s32.totalorder %s193_s12, 0 }
   0xb   : > { %p1333_p8 = por %p215_p5, %p214_p3  ;;  %p264_p9 = scmp.lt.s32.totalorder %s1241_s29, 3 }
   0xc   : > { %s1339_s14 = scalar_select %p196_p7, %s1229_s26, %s198_s10  }
   0xd   : > { %p265_p10 = pnand %p1053_p6, %p264_p9 }
   0xe   : > { %v1061_v0 = vld.sshfl [vmem:[%s1537_s0] sm:$0x11 pattern:$0x75316420] (!%p265_p10)  ;;  %v407_v1 = vlaneseq (!%p265_p10)  ;;  %v1243_v2 = vmov (!%p265_p10), 1966171168  }
   0xf   : > { %268 = sbr.rel (%p265_p10) target bundleno = 1222 (0x4c6), region = 48  ;;  %v405_v3 = vunpack.c.l.s4 (!%p265_p10), %v1243_v2  ;;  %v1244_v5 = vmov (!%p265_p10), 0   ;;  %v403_v6 = vcombine.high (!%p265_p10), %v1061_v0, %v1061_v0  ;;  %p305_p11 = scmp.lt.s32.totalorder (!%p265_p10), %s1233_s27, 1  ;;  %vm431_vm0 = vcmask (!%p265_p10), 1040384   ;;  %v1151_v12 = vld [vmem:[%s1539_s2] sm:$0xff] (!%p265_p10)   ;;  %v337_v25 = vld [vmem:[%s1543_s6 + $0x8] sm:$0xff] (!%p265_p10) }
  0x10   : > { %v408_v4 = vshrl.u32 (!%p265_p10), %v407_v1, 7  ;;  %470 = vmatprep.mubr.bf16.mxu0 (!%p265_p10), %v1244_v5  ;;  %1149 = vset.pattern.permute.xlu0 (!%p265_p10), %v1244_v5  ;;  %vm418_vm1 = vcmask (!%p265_p10), 15360   ;;  %v336_v24 = vld [vmem:[%s1543_s6] sm:$0xff] (!%p265_p10)  ;;  %v338_v27 = vld [vmem:[%s1543_s6 + $0x10] sm:$0xff] (!%p265_p10)  ;;  %v1152_v28 = vld [vmem:[%s1539_s2 + $0x8] sm:$0xff] (!%p265_p10)   ;;  %vm565_vm2 = vcmask (!%p265_p10), 523264  }
  0x11   : > { %v406_v7 = vunpack.c.0.s8 (!%p265_p10), %v405_v3  ;;  %1150 = vset.pattern.permute.xlu1 (!%p265_p10), %v1244_v5  ;;  %604 = vmatprep.mubr.bf16.mxu1 (!%p265_p10), %v1244_v5  ;;  %v339_v29 = vld [vmem:[%s1543_s6 + $0x18] sm:$0xff] (!%p265_p10)  ;;  %v345_v32 = vpack.c.bf16 (!%p265_p10), %v337_v25, %v336_v24  ;;  %v1153_v42 = vld [vmem:[%s1539_s2 + $0x10] sm:$0xff] (!%p265_p10)   ;;  %v340_v44 = vld [vmem:[%s1543_s6 + $0x20] sm:$0xff] (!%p265_p10)  ;;  %vm667_vm3 = vcmask (!%p265_p10), 261120   ;;  %s297_s15 = sand.u32 (!%p265_p10), 1, %s1225_s25  }
  0x12   : > { %v346_v33 = vpack.c.bf16 (!%p265_p10), %v339_v29, %v338_v27  ;;  %v341_v45 = vld [vmem:[%s1543_s6 + $0x28] sm:$0xff] (!%p265_p10)  ;;  %v342_v47 = vld [vmem:[%s1543_s6 + $0x30] sm:$0xff] (!%p265_p10)  ;;  %v343_v48 = vld [vmem:[%s1543_s6 + $0x38] sm:$0xff] (!%p265_p10)  ;;  %s1054_s16 = sshll.u32 (!%p265_p10), %s297_s15, 2  ;;  %s950_s22 = scalar_lea.sflag (!%p265_p10), [#allocation3], %s297_s15 }
  0x13   : > { %v409_v8 = vsub.s32 (!%p265_p10), %v406_v7, %v408_v4  ;;  %v347_v49 = vpack.c.bf16 (!%p265_p10), %v341_v45, %v340_v44  ;;  %v348_v50 = vpack.c.bf16 (!%p265_p10), %v343_v48, %v342_v47  ;;  %v1154_v51 = vld [vmem:[%s1539_s2 + $0x18] sm:$0xff] (!%p265_p10)   ;;  %v344_v52 = vld [vmem:[%s1543_s6 + $0x40] sm:$0x3] (!%p265_p10) }
  0x15   : > { %v417_v9 = vrot.slane (!%p265_p10), %v403_v6, %v409_v8  ;;  %v410_v10 = vrot.slane (!%p265_p10), %v1061_v0, %v409_v8 }
  0x16   : > { %s306_s17 = scalar_select %p305_p11, %s1233_s27, 1 }
  0x17   : > { %1062 = vmatprep.subr.msk.bf16.mxu0 %vm431_vm0, %v417_v9  ;;  %v433_v11 = vsel %vm431_vm0, %v410_v10, 0 }
  0x18   : > { %s1090_s18 = sshll.u32 %s306_s17, 7  ;;  %439 = vmatpush1.bf16.msra.mxu0 %v433_v11  ;;  %s299_s17 = scalar_lea.vmem [#allocation2], %s1054_s16 }
  0x19   : > { %s1356_s23 = scalar_lea.vmem %s1538_s1, %s1090_s18  ;;  %s966_s18 = sshll.u32 %s299_s17, 4  ;;  %s1492_s18 = int_to_ptr.vmem [resolvable:$true] %s966_s18 }
  0x1a   : > { %v312_v13 = vld [vmem:[%s1356_s23] sm:$0xff]  ;;  %v313_v14 = vld [vmem:[%s1356_s23 + $0x8] sm:$0xff]  ;;  %v314_v15 = vld [vmem:[%s1356_s23 + $0x10] sm:$0xff]  ;;  %s1163_s30 = scalar_lea.vmem %s1492_s18, 64 }
  0x1b   : > { %v328_v16 = vpack.c.bf16 %v313_v14, %v312_v13  ;;  %v315_v17 = vld [vmem:[%s1356_s23 + $0x18] sm:$0xff]  ;;  %v316_v18 = vld [vmem:[%s1356_s23 + $0x20] sm:$0xff]  ;;  %v317_v19 = vld [vmem:[%s1356_s23 + $0x28] sm:$0xff]  ;;  %1063 = vmatmul.mubr.msk.bf16.vlgmr.msra.gmra.mrb[0].mxu0 %vm418_vm1, %v1151_v12  ;;  %p1164_p12 = scmp.ne.s32.totalorder %s1492_s18, %s1163_s30 }
  0x1c   : > { %v330_v20 = vpack.c.bf16 %v317_v19, %v316_v18  ;;  %v318_v21 = vld [vmem:[%s1356_s23 + $0x30] sm:$0xff]  ;;  %v329_v22 = vpack.c.bf16 %v315_v17, %v314_v15  ;;  %v319_v23 = vld [vmem:[%s1356_s23 + $0x38] sm:$0xff]  ;;  %480 = vmatprep.mubr.bf16.mxu0 %v1244_v5  ;;  %v320_v30 = vld [vmem:[%s1356_s23 + $0x40] sm:$0xff] }
  0x1d   : > { %521 = vperm.xlu0 %1149, %v328_v16   ;;  %v331_v26 = vpack.c.bf16 %v319_v23, %v318_v21  ;;  %v321_v31 = vld [vmem:[%s1356_s23 + $0x48] sm:$0xff]  ;;  %v322_v34 = vld [vmem:[%s1356_s23 + $0x50] sm:$0xff]  ;;  %v323_v35 = vld [vmem:[%s1356_s23 + $0x58] sm:$0xff]  ;;  %p1165_p13 = pnand %p1164_p12, %p1326_p4 }
  0x1e   : > { %531 = vperm.xlu1 %1150, %v330_v20   ;;  %v332_v36 = vpack.c.bf16 %v321_v31, %v320_v30  ;;  %v324_v37 = vld [vmem:[%s1356_s23 + $0x60] sm:$0xff]  ;;  %v325_v38 = vld [vmem:[%s1356_s23 + $0x68] sm:$0xff]  ;;  %v333_v39 = vpack.c.bf16 %v323_v35, %v322_v34  ;;  %v326_v40 = vld [vmem:[%s1356_s23 + $0x70] sm:$0xff] }
  0x1f   : > { %v327_v41 = vld [vmem:[%s1356_s23 + $0x78] sm:$0xff]  ;;  %v334_v43 = vpack.c.bf16 %v325_v38, %v324_v37  ;;  %v1155_v34 = vld [vmem:[%s1540_s3] sm:$0xff]   ;;  %v1156_v35 = vld [vmem:[%s1540_s3 + $0x8] sm:$0xff]   ;;  %s1091_s23 = sshll.u32 %s1233_s27, 6  ;;  %p1166_p0 = pneg %p1165_p13 }
  0x20   : > { %v335_v46 = vpack.c.bf16 %v327_v41, %v326_v40  ;;  %s1490_s21 = scalar_lea.hbm %s1544_s7, %s1091_s23  ;;  %s1245_s27 = smov [#allocation2]  }
  0x21   : > { %526 = vperm.xlu0 %1149, %v329_v22   ;;  %s1167_s8 = sshll.u32 %s1245_s27, 4  ;;  %s1168_s8 = int_to_ptr.vmem [resolvable:$false] %s1167_s8 }
  0x22   : > { %536 = vperm.xlu1 %1150, %v331_v26   ;;  %s1169_s10 = scalar_lea.vmem %s1168_s8, 128  ;;  %p1170_p1 = scmp.lt.s32.totalorder %s1492_s18, %s1168_s8 }
  0x23   : > { %1064 = vmatmul.mubr.msk.bf16.gmra.mrb[4].mxu0 %vm418_vm1, %v1152_v28  ;;  %p1171_p2 = scmp.lt.s32.totalorder %s1169_s10, %s1163_s30 }
  0x24   : > { %490 = vmatprep.mubr.bf16.mxu0 %v1244_v5 }
  0x25   : > { %631 = vperm.xlu0 %1149, %v345_v32   ;;  %p1172_p3 = por %p1171_p2, %p1170_p1 }
  0x26   : > { %636 = vperm.xlu1 %1150, %v346_v33  }
  0x27   : > { %p1173_p5 = pnand %p1172_p3, %p1166_p0 }
  0x29   : > { %763 = vperm.xlu0 %1149, %v332_v36  }
  0x2a   : > { %768 = vperm.xlu1 %1150, %v333_v39  }
  0x2b   : > { %1065 = vmatmul.mubr.msk.bf16.gmra.mrb[8].mxu0 %vm418_vm1, %v1153_v42 }
  0x2c   : > { %500 = vmatprep.mubr.bf16.mxu0 %v1244_v5 }
  0x2d   : > { %773 = vperm.xlu0 %1149, %v334_v43  }
  0x2e   : > { %778 = vperm.xlu1 %1150, %v335_v46  }
  0x31   : > { %872 = vperm.xlu0 %1149, %v347_v49  }
  0x32   : > { %877 = vperm.xlu1 %1150, %v348_v50  }
  0x33   : > { %1066 = vmatmul.mubr.msk.bf16.gmra.mrb[12].mxu0 %vm418_vm1, %v1154_v51 }
  0x34   : > { %845 = vmatprep.mubr.bf16.mxu0 %v1244_v5 }
  0x35   : > { %890 = vperm.xlu0 %1149, %v344_v52  }
  0x9c   : > { %v522_v58 = vpop.permute.xlu0 %521 }
  0x9d   : > { %v532_v17 = vpop.permute.xlu1 %531 }
  0xa0   : > { %v527_v6 = vpop.permute.xlu0 %526 }
  0xa1   : > { %v537_v28 = vpop.permute.xlu1 %536 }
  0xa4   : > { %v632_v41 = vpop.permute.xlu0 %631 }
  0xa5   : > { %v637_v52 = vpop.permute.xlu1 %636 }
  0xee   : > { %v472_v53 = vpop.f32.mrb[0].mxu0 }
  0xef   : > { %v474_v54 = vpop.f32.mrb[1].mxu0 }
  0xf0   : > { %v476_v55 = vpop.f32.mrb[2].mxu0 }
  0xf1   : > { %v511_v56 = vpack.c.bf16 %v476_v55, %v472_v53  ;;  %v478_v57 = vpop.f32.mrb[3].mxu0 }
  0xf2   : > { %v512_v59 = vpack.c.bf16 %v478_v57, %v474_v54 }
  0xf3   : > { %v539_v60 = vadd.bf16 %v522_v58, %v511_v56 }
  0xf4   : > { %v540_v61 = vadd.bf16 %v522_v58, %v512_v59  ;;  %v1157_v58 = vld [vmem:[%s1541_s4] sm:$0xff]   ;;  %v1158_v59 = vld [vmem:[%s1541_s4 + $0x8] sm:$0xff]  }
  0xf5   : > { %v547_v1 = vmax.bf16 %v1244_v5, %v539_v60  ;;  %v1159_v60 = vld [vmem:[%s1541_s4 + $0x10] sm:$0xff]  }
  0xf6   : > { %v482_v62 = vpop.f32.mrb[4].mxu0  ;;  %v548_v63 = vmax.bf16 %v1244_v5, %v540_v61  ;;  %v1160_v61 = vld [vmem:[%s1541_s4 + $0x18] sm:$0xff]  }
  0xf7   : > { %v484_v0 = vpop.f32.mrb[5].mxu0 }
  0xf8   : > { %v486_v2 = vpop.f32.mrb[6].mxu0  ;;  %572 = vmatprep.subr.bf16.mxu1 %v548_v63 }
  0xf9   : > { %v513_v3 = vpack.c.bf16 %v486_v2, %v482_v62  ;;  %v488_v4 = vpop.f32.mrb[7].mxu0  ;;  %573 = vmatpush1.bf16.msra.mxu1 %v547_v1 }
  0xfa   : > { %v514_v7 = vpack.c.bf16 %v488_v4, %v484_v0 }
  0xfb   : > { %v541_v8 = vadd.bf16 %v527_v6, %v513_v3  ;;  %v764_v3 = vpop.permute.xlu0 %763 }
  0xfc   : > { %v542_v9 = vadd.bf16 %v527_v6, %v514_v7 }
  0xfd   : > { %v549_v13 = vmax.bf16 %v1244_v5, %v541_v8 }
  0xfe   : > { %v492_v10 = vpop.f32.mrb[8].mxu0  ;;  %v550_v11 = vmax.bf16 %v1244_v5, %v542_v9 }
  0xff   : > { %v494_v12 = vpop.f32.mrb[9].mxu0 }
 0x100   : > { %v496_v14 = vpop.f32.mrb[10].mxu0  ;;  %574 = vmatprep.subr.bf16.mxu1 %v550_v11 }
 0x101   : > { %v515_v15 = vpack.c.bf16 %v496_v14, %v492_v10  ;;  %v498_v16 = vpop.f32.mrb[11].mxu0  ;;  %575 = vmatpush1.bf16.msra.mxu1 %v549_v13 }
 0x102   : > { %v516_v18 = vpack.c.bf16 %v498_v16, %v494_v12 }
 0x103   : > { %v543_v19 = vadd.bf16 %v532_v17, %v515_v15  ;;  %v769_v15 = vpop.permute.xlu1 %768 }
 0x104   : > { %v544_v20 = vadd.bf16 %v532_v17, %v516_v18 }
 0x105   : > { %v551_v24 = vmax.bf16 %v1244_v5, %v543_v19 }
 0x106   : > { %v502_v21 = vpop.f32.mrb[12].mxu0  ;;  %v552_v22 = vmax.bf16 %v1244_v5, %v544_v20 }
 0x107   : > { %v504_v23 = vpop.f32.mrb[13].mxu0 }
 0x108   : > { %v506_v25 = vpop.f32.mrb[14].mxu0  ;;  %576 = vmatprep.subr.bf16.mxu1 %v552_v22 }
 0x109   : > { %v517_v26 = vpack.c.bf16 %v506_v25, %v502_v21  ;;  %v508_v27 = vpop.f32.mrb[15].mxu0  ;;  %577 = vmatpush1.bf16.msra.mxu1 %v551_v24 }
 0x10a   : > { %v518_v29 = vpack.c.bf16 %v508_v27, %v504_v23 }
 0x10b   : > { %v545_v30 = vadd.bf16 %v537_v28, %v517_v26  ;;  %v774_v26 = vpop.permute.xlu0 %773 }
 0x10c   : > { %v546_v31 = vadd.bf16 %v537_v28, %v518_v29 }
 0x10d   : > { %v553_v33 = vmax.bf16 %v1244_v5, %v545_v30 }
 0x10e   : > { %v554_v32 = vmax.bf16 %v1244_v5, %v546_v31 }
 0x110   : > { %578 = vmatprep.subr.bf16.mxu1 %v554_v32 }
 0x111   : > { %579 = vmatpush1.bf16.msra.mxu1 %v553_v33 }
 0x114   : > { %1069 = vmatmul.mubr.msk.bf16.vlgmr.msra.gmra.mrb[0].mxu1 %vm565_vm2, %v1155_v34 }
 0x115   : > { %614 = vmatprep.mubr.bf16.mxu1 %v1244_v5 }
 0x11c   : > { %1070 = vmatmul.mubr.msk.bf16.gmra.mrb[4].mxu1 %vm565_vm2, %v1156_v35 }
 0x11d   : > { %712 = vmatprep.mubr.bf16.mxu1 %v1244_v5 }
 0x1e7   : > { %v606_v36 = vpop.f32.mrb[0].mxu1 }
 0x1e8   : > { %v608_v37 = vpop.f32.mrb[1].mxu1 }
 0x1e9   : > { %v610_v38 = vpop.f32.mrb[2].mxu1 }
 0x1ea   : > { %v625_v39 = vpack.c.bf16 %v610_v38, %v606_v36  ;;  %v612_v40 = vpop.f32.mrb[3].mxu1 }
 0x1eb   : > { %v626_v42 = vpack.c.bf16 %v612_v40, %v608_v37  ;;  %v779_v37 = vpop.permute.xlu1 %778 }
 0x1ec   : > { %v639_v43 = vadd.bf16 %v632_v41, %v625_v39 }
 0x1ed   : > { %v640_v44 = vadd.bf16 %v632_v41, %v626_v42 }
 0x1ee   : > { %v643_v47 = vmax.bf16 %v1244_v5, %v639_v43  ;;  %v1161_v43 = vld [vmem:[%s1540_s3 + $0x10] sm:$0xff]  }
 0x1ef   : > { %v616_v45 = vpop.f32.mrb[4].mxu1  ;;  %v644_v46 = vmax.bf16 %v1244_v5, %v640_v44  ;;  %v1162_v44 = vld [vmem:[%s1540_s3 + $0x18] sm:$0xff]  }
 0x1f0   : > { %v618_v48 = vpop.f32.mrb[5].mxu1 }
 0x1f1   : > { %v620_v49 = vpop.f32.mrb[6].mxu1  ;;  %680 = vmatprep.subr.bf16.mxu1 %v644_v46 }
 0x1f2   : > { %v627_v50 = vpack.c.bf16 %v620_v49, %v616_v45  ;;  %v622_v51 = vpop.f32.mrb[7].mxu1  ;;  %681 = vmatpush1.bf16.msra.mxu1 %v643_v47 }
 0x1f3   : > { %v628_v53 = vpack.c.bf16 %v622_v51, %v618_v48 }
 0x1f4   : > { %v641_v54 = vadd.bf16 %v637_v52, %v627_v50  ;;  %v873_v50 = vpop.permute.xlu0 %872 }
 0x1f5   : > { %v642_v55 = vadd.bf16 %v637_v52, %v628_v53 }
 0x1f6   : > { %v645_v57 = vmax.bf16 %v1244_v5, %v641_v54 }
 0x1f7   : > { %v646_v56 = vmax.bf16 %v1244_v5, %v642_v55 }
 0x1f9   : > { %682 = vmatprep.subr.bf16.mxu1 %v646_v56 }
 0x1fa   : > { %683 = vmatpush1.bf16.msra.mxu1 %v645_v57 }
 0x1fd   : > { %1075 = vmatmul.mubr.msk.bf16.vlgmr.msra.gmra.mrb[8].mxu1 %vm667_vm3, %v1157_v58 }
 0x1fe   : > { %722 = vmatprep.mubr.bf16.mxu1 %v1244_v5 }
 0x205   : > { %1076 = vmatmul.mubr.msk.bf16.gmra.mrb[12].mxu1 %vm667_vm3, %v1158_v59 }
 0x206   : > { %732 = vmatprep.mubr.bf16.mxu1 %v1244_v5 }
 0x20d   : > { %1077 = vmatmul.mubr.msk.bf16.gmra.mrb[16].mxu1 %vm667_vm3, %v1159_v60 }
 0x20e   : > { %742 = vmatprep.mubr.bf16.mxu1 %v1244_v5 }
 0x215   : > { %1078 = vmatmul.mubr.msk.bf16.gmra.mrb[20].mxu1 %vm667_vm3, %v1160_v61  ;;  %v878_v61 = vpop.permute.xlu1 %877 }
 0x2d0   : > { %v714_v62 = vpop.f32.mrb[8].mxu1 }
 0x2d1   : > { %v716_v63 = vpop.f32.mrb[9].mxu1 }
 0x2d2   : > { %v718_v0 = vpop.f32.mrb[10].mxu1 }
 0x2d3   : > { %v753_v1 = vpack.c.bf16 %v718_v0, %v714_v62  ;;  %v720_v2 = vpop.f32.mrb[11].mxu1 }
 0x2d4   : > { %v754_v4 = vpack.c.bf16 %v720_v2, %v716_v63 }
 0x2d5   : > { %v781_v6 = vadd.bf16 %v764_v3, %v753_v1 }
 0x2d6   : > { %v782_v7 = vadd.bf16 %v764_v3, %v754_v4  ;;  %v373_v3 = vld [vmem:[%s1542_s5] sm:$0x1]  ;;  %v891_v4 = vpop.permute.xlu0 %890 }
 0x2d7   : > { %v789_v10 = vmax.bf16 %v1244_v5, %v781_v6 }
 0x2d8   : > { %v724_v8 = vpop.f32.mrb[12].mxu1  ;;  %v790_v9 = vmax.bf16 %v1244_v5, %v782_v7 }
 0x2d9   : > { %v726_v11 = vpop.f32.mrb[13].mxu1 }
 0x2da   : > { %v728_v12 = vpop.f32.mrb[14].mxu1  ;;  %813 = vmatprep.subr.bf16.mxu0 %v790_v9 }
 0x2db   : > { %v755_v13 = vpack.c.bf16 %v728_v12, %v724_v8  ;;  %v730_v14 = vpop.f32.mrb[15].mxu1  ;;  %814 = vmatpush1.bf16.msra.mxu0 %v789_v10 }
 0x2dc   : > { %v756_v16 = vpack.c.bf16 %v730_v14, %v726_v11 }
 0x2dd   : > { %v783_v17 = vadd.bf16 %v769_v15, %v755_v13 }
 0x2de   : > { %v784_v18 = vadd.bf16 %v769_v15, %v756_v16 }
 0x2df   : > { %v791_v21 = vmax.bf16 %v1244_v5, %v783_v17 }
 0x2e0   : > { %v734_v19 = vpop.f32.mrb[16].mxu1  ;;  %v792_v20 = vmax.bf16 %v1244_v5, %v784_v18 }
 0x2e1   : > { %v736_v22 = vpop.f32.mrb[17].mxu1 }
 0x2e2   : > { %v738_v23 = vpop.f32.mrb[18].mxu1  ;;  %815 = vmatprep.subr.bf16.mxu0 %v792_v20 }
 0x2e3   : > { %v757_v24 = vpack.c.bf16 %v738_v23, %v734_v19  ;;  %v740_v25 = vpop.f32.mrb[19].mxu1  ;;  %816 = vmatpush1.bf16.msra.mxu0 %v791_v21 }
 0x2e4   : > { %v758_v27 = vpack.c.bf16 %v740_v25, %v736_v22 }
 0x2e5   : > { %v785_v28 = vadd.bf16 %v774_v26, %v757_v24 }
 0x2e6   : > { %v786_v29 = vadd.bf16 %v774_v26, %v758_v27 }
 0x2e7   : > { %v793_v32 = vmax.bf16 %v1244_v5, %v785_v28 }
 0x2e8   : > { %v744_v30 = vpop.f32.mrb[20].mxu1  ;;  %v794_v31 = vmax.bf16 %v1244_v5, %v786_v29 }
 0x2e9   : > { %v746_v33 = vpop.f32.mrb[21].mxu1 }
 0x2ea   : > { %v748_v34 = vpop.f32.mrb[22].mxu1  ;;  %817 = vmatprep.subr.bf16.mxu0 %v794_v31 }
 0x2eb   : > { %v759_v35 = vpack.c.bf16 %v748_v34, %v744_v30  ;;  %v750_v36 = vpop.f32.mrb[23].mxu1  ;;  %818 = vmatpush1.bf16.msra.mxu0 %v793_v32 }
 0x2ec   : > { %v760_v38 = vpack.c.bf16 %v750_v36, %v746_v33 }
 0x2ed   : > { %v787_v39 = vadd.bf16 %v779_v37, %v759_v35 }
 0x2ee   : > { %v788_v40 = vadd.bf16 %v779_v37, %v760_v38 }
 0x2ef   : > { %v795_v42 = vmax.bf16 %v1244_v5, %v787_v39 }
 0x2f0   : > { %v796_v41 = vmax.bf16 %v1244_v5, %v788_v40 }
 0x2f2   : > { %819 = vmatprep.subr.bf16.mxu0 %v796_v41 }
 0x2f3   : > { %820 = vmatpush1.bf16.msra.mxu0 %v795_v42 }
 0x2f6   : > { %1081 = vmatmul.mubr.msk.bf16.vlgmr.msra.gmra.mrb[16].mxu0 %vm565_vm2, %v1161_v43 }
 0x2f7   : > { %855 = vmatprep.mubr.bf16.mxu0 %v1244_v5 }
 0x2fe   : > { %1082 = vmatmul.mubr.msk.bf16.gmra.mrb[20].mxu0 %vm565_vm2, %v1162_v44 }
 0x2ff   : > { %928 = vmatprep.mubr.bf16.mxu0 %v1244_v5 }
 0x3c9   : > { %v847_v45 = vpop.f32.mrb[16].mxu0 }
 0x3ca   : > { %v849_v46 = vpop.f32.mrb[17].mxu0 }
 0x3cb   : > { %v851_v47 = vpop.f32.mrb[18].mxu0 }
 0x3cc   : > { %v866_v48 = vpack.c.bf16 %v851_v47, %v847_v45  ;;  %v853_v49 = vpop.f32.mrb[19].mxu0 }
 0x3cd   : > { %v867_v51 = vpack.c.bf16 %v853_v49, %v849_v46 }
 0x3ce   : > { %v880_v52 = vadd.bf16 %v873_v50, %v866_v48 }
 0x3cf   : > { %v881_v53 = vadd.bf16 %v873_v50, %v867_v51 }
 0x3d0   : > { %v884_v56 = vmax.bf16 %v1244_v5, %v880_v52 }
 0x3d1   : > { %v857_v54 = vpop.f32.mrb[20].mxu0  ;;  %v885_v55 = vmax.bf16 %v1244_v5, %v881_v53 }
 0x3d2   : > { %v859_v57 = vpop.f32.mrb[21].mxu0 }
 0x3d3   : > { %v861_v58 = vpop.f32.mrb[22].mxu0  ;;  %896 = vmatprep.subr.bf16.mxu0 %v885_v55 }
 0x3d4   : > { %v868_v59 = vpack.c.bf16 %v861_v58, %v857_v54  ;;  %v863_v60 = vpop.f32.mrb[23].mxu0  ;;  %897 = vmatpush1.bf16.msra.mxu0 %v884_v56 }
 0x3d5   : > { %v869_v62 = vpack.c.bf16 %v863_v60, %v859_v57 }
 0x3d6   : > { %v882_v63 = vadd.bf16 %v878_v61, %v868_v59 }
 0x3d7   : > { %v883_v0 = vadd.bf16 %v878_v61, %v869_v62 }
 0x3d8   : > { %v886_v2 = vmax.bf16 %v1244_v5, %v882_v63 }
 0x3d9   : > { %v887_v1 = vmax.bf16 %v1244_v5, %v883_v0 }
 0x3db   : > { %898 = vmatprep.subr.bf16.mxu0 %v887_v1 }
 0x3dc   : > { %899 = vmatpush1.bf16.msra.mxu0 %v886_v2 }
 0x3df   : > { %1083 = vmatmul.mubr.msk.bf16.vlgmr.msra.gmra.mrb[24].mxu0 %vm667_vm3, %v373_v3 }
 0x4b2   : > { %v930_v6 = vpop.f32.mrb[24].mxu0 }
 0x4b3   : > { %v931_v7 = vadd.f32 %v930_v6, %v891_v4  ;;  %v932_v8 = vpop.f32.mrb[25].mxu0 }
 0x4b4   : > { %v933_v9 = vadd.f32 %v932_v8, %v891_v4  ;;  %v934_v5 = vpop.f32.mrb[26].mxu0 }
 0x4b5   : > { %v935_v10 = vpop.f32.mrb[27].mxu0 }
 0x4b6   : > { %v939_v11 = vcombine.low %v931_v7, %v933_v9 }
 0x4b8   : > { %1084 = vst.sshfl [vmem:[%s299_s17] sm:$0x33 pattern:$0x76325410] %v939_v11 }
 0x4b9   : > { %1176 = shalt.err (!%p1173_p5)
}
 0x4ba   : > { %s1177_s12 = scalar_lea.hbm %s1490_s21, 64  ;;  %s1181_s23 = scalar_lea.hbm %s1544_s7, 128 }
 0x4bb   : > { %p1178_p6 = scmp.ne.s32.totalorder %s1490_s21, %s1177_s12  ;;  %p1182_p10 = scmp.lt.u32.totalorder %s1490_s21, %s1544_s7 }
 0x4bc   : > { %p1183_p11 = scmp.lt.u32.totalorder %s1181_s23, %s1177_s12  ;;  %p1185_p13 = scmp.lt.u32.totalorder %s1177_s12, %s1490_s21 }
 0x4bd   : > { %p1179_p7 = pnand %p1178_p6, %p1326_p4 }
 0x4be   : > { %p1184_p12 = por %p1183_p11, %p1182_p10 }
 0x4bf   : > { %p1180_p9 = pneg %p1179_p7 }
 0x4c0   : > { %p1186_p0 = por %p1185_p13, %p1184_p12 }
 0x4c2   : > { %p1187_p1 = pnand %p1186_p0, %p1180_p9 }
 0x4c4   : > { %1190 = shalt.err (!%p1187_p1)
}
 0x4c5   : > { %1092 = dma.vmem_to_hbm [thread:$0]  (%p1326_p4), %s1492_s18, 64, %s1490_s21, %s950_s22  }
 0x4c6 PF: > { %p1098_p2 = scmp.ge.s32.totalorder %s1241_s29, 2  ;;  %s978_s20 = sand.u32 1, %s1221_s24  }
 0x4c7   : > { %s979_s30 = scalar_lea.sflag [#allocation3], %s978_s20 }
 0x4c8   : > { %p1095_p3 = pnand %p1098_p2, %p1333_p8 }
 0x4ca   : > { %1216 = dma.done.wait (!%p1095_p3), %s979_s30, 64  }
 0x4cb   : > { %1218 = vsyncadd (!%p1095_p3), %s979_s30, 4294967232  ;;  %s20_s29 = sadd.s32 1, %s1241_s29   ;;  %s1547_s24 = smov %s1225_s25 }
 0x4cc   : > { %p17_p5 = scmp.ge.s32.totalorder %s20_s29, 4   ;;  %s1548_s25 = smov %s1229_s26 }
 0x4cd   : > { %s1549_s26 = smov %s1339_s14  ;;  %s1550_s27 = smov %s1237_s28 }
 0x4ce   : > { %s1551_s28 = smov %s1553_s9  ;;  %19 = sbr.rel (!%p17_p5) target bundleno = 4 (0x4), region = 86 }
 0x4d5   :  { %984 = vsyncpa [#allocation3], 1 }
 0x4d6   :  { %986 = vsyncpa [#allocation3 + $0x1], 1 }

</bundles_post_ra>
